<compile_context>
chip_gen: v7x
topology: tpu7x:2x2x1
jax: 0.10.0
libtpu: 0.0.40
codegen_flags: <defaults>
</compile_context>

<pallas_src>
import functools

import jax
import jax.numpy as jnp
from jax import lax
from jax.experimental import pallas as pl
from jax.experimental.pallas import tpu as pltpu


def _logreg_kernel(x_ref, w_ref, b_ref, o_ref, *, tf, n_features, num_k):
    # x_ref: (TB, TF) VMEM streamed tile of x.
    # w_ref: (1, F_w) VMEM, whole (padded) weight row, resident across the grid.
    # b_ref: (1, 1) SMEM scalar bias.
    # o_ref: (1, TB) f32 VMEM output block (lane-dense), doubles as the accumulator.
    k = pl.program_id(1)

    @pl.when(k == 0)
    def _init():
        o_ref[...] = jnp.zeros_like(o_ref)

    x = x_ref[...]
    if n_features % tf != 0:
        # Tail feature tile reads past F: mask OOB columns. Do NOT rely on
        # 0 (padded weight) * garbage: stale VMEM may hold NaN/Inf and 0*NaN=NaN.
        col = lax.broadcasted_iota(jnp.int32, x.shape, dimension=1)
        x = jnp.where(col + k * tf < n_features, x, jnp.zeros_like(x))

    if num_k == 1:
        w = w_ref[...]
    else:
        off = pl.multiple_of(k * tf, 128)
        w = w_ref[:, pl.ds(off, tf)]

    # (1, TF) . (TB, TF) contracting the feature axis -> (1, TB); MXU, f32 accumulate.
    o_ref[...] += lax.dot_general(
        w, x,
        dimension_numbers=(((1,), (1,)), ((), ())),
        preferred_element_type=jnp.float32,
    )

    @pl.when(k == num_k - 1)
    def _finalize():
        logits = o_ref[...] + b_ref[0, 0]
        # exp goes to the (idle) EUP; exact reciprocal keeps ~f32 accuracy for free here.
        o_ref[...] = 1.0 / (1.0 + jnp.exp(-logits))


def _cdiv(a, b):
    return -(-a // b)


def _round_up(n, m):
    return _cdiv(n, m) * m


def logistic_regression_forward(x, weight, bias, *, tb_max=1024, tf_max=2048):
    """x: (B, F), weight: (1, F), bias: (1,)  ->  (B, 1) = sigmoid(x @ W^T + b)."""
    B, F = x.shape
    out_dtype = x.dtype

    # Batch tile: multiple of 128 (lane-dense output); aim for >= 2 batch tiles when B
    # allows so both v7x TensorCores get work; cap at tb_max to amortize step overhead.
    TB = min(tb_max, max(128, _round_up(_cdiv(B, 2), 128)))
    num_i = _cdiv(B, TB)

    # Feature tile: the whole row when it fits (single reduction step, no masking),
    # otherwise 128-aligned reduction chunks.
    TF = F if F <= tf_max else tf_max
    num_k = _cdiv(F, TF)

    # Pad only the tiny weight row so the in-kernel (1, TF) slice is always in bounds.
    F_w = num_k * TF
    w_p = weight.astype(x.dtype)
    if F_w != F:
        w_p = jnp.pad(w_p, ((0, 0), (0, F_w - F)))
    bias2d = bias.reshape(1, 1).astype(jnp.float32)

    kernel = functools.partial(_logreg_kernel, tf=TF, n_features=F, num_k=num_k)

    out = pl.pallas_call(
        kernel,
        out_shape=jax.ShapeDtypeStruct((1, B), jnp.float32),
        grid_spec=pltpu.PrefetchScalarGridSpec(
            num_scalar_prefetch=0,
            grid=(num_i, num_k),
            in_specs=[
                pl.BlockSpec((TB, TF), lambda i, k: (i, k)),        # streamed x tiles
                pl.BlockSpec((1, F_w), lambda i, k: (0, 0)),        # resident weight row
                pl.BlockSpec(memory_space=pltpu.MemorySpace.SMEM),  # bias scalar in SMEM
            ],
            out_specs=pl.BlockSpec((1, TB), lambda i, k: (0, i)),   # lane-dense output row
        ),
        compiler_params=pltpu.CompilerParams(
            dimension_semantics=("parallel", "arbitrary"),
            vmem_limit_bytes=48 * 1024 * 1024,
        ),
    )(x, w_p, bias2d)

    # (1, B) lane-dense slab -> (B, 1).
    return out[0, :B].reshape(B, 1).astype(out_dtype)


def _ref_forward(x, weight, bias):
    return jax.nn.sigmoid(x @ weight.T + bias)


if __name__ == "__main__":
    key = jax.random.PRNGKey(0)

    # Small case matching the module's implied shapes.
    batch, n_features = 8, 32
    kx, kw, kb = jax.random.split(key, 3)
    x = jax.random.normal(kx, (batch, n_features), dtype=jnp.float32)
    # Deterministic nn.Linear-style init: U(-1/sqrt(fan_in), 1/sqrt(fan_in))
    bound = 1.0 / (n_features ** 0.5)
    weight = jax.random.uniform(kw, (1, n_features), minval=-bound, maxval=bound,
                                dtype=jnp.float32)
    bias = jax.random.uniform(kb, (1,), minval=-bound, maxval=bound, dtype=jnp.float32)

    y = logistic_regression_forward(x, weight, bias)
    jax.block_until_ready(y)
    y_ref = _ref_forward(x, weight, bias)
    assert y.shape == (batch, 1), y.shape
    assert jnp.allclose(y, y_ref, atol=1e-5, rtol=1e-5), "mismatch vs reference (small)"

    # Exercise multi-tile batch + multi-step feature reduction + unaligned (masked) tails.
    B2, F2 = 300, 200
    kx2, kw2, kb2 = jax.random.split(jax.random.fold_in(key, 1), 3)
    x2 = jax.random.normal(kx2, (B2, F2), dtype=jnp.float32)
    bound2 = 1.0 / (F2 ** 0.5)
    w2 = jax.random.uniform(kw2, (1, F2), minval=-bound2, maxval=bound2, dtype=jnp.float32)
    b2 = jax.random.uniform(kb2, (1,), minval=-bound2, maxval=bound2, dtype=jnp.float32)

    y2 = logistic_regression_forward(x2, w2, b2, tb_max=128, tf_max=128)
    jax.block_until_ready(y2)
    y2_ref = _ref_forward(x2, w2, b2)
    assert y2.shape == (B2, 1), y2.shape
    assert jnp.allclose(y2, y2_ref, atol=1e-5, rtol=1e-5), "mismatch vs reference (tiled)"

    print("KERNEL_OK")
</pallas_src>

<mosaic_0001>
module attributes {stable_mosaic.version = 11 : i64} {
  func.func @_logreg_kernel(%arg0: i32, %arg1: i32, %arg2: memref<128x32xf32, #tpu.memory_space<vmem>>, %arg3: memref<1x32xf32, #tpu.memory_space<vmem>>, %arg4: memref<1x1xf32, #tpu.memory_space<smem>>, %arg5: memref<1x128xf32, #tpu.memory_space<vmem>>) attributes {dimension_semantics = [#tpu.dimension_semantics<parallel>, #tpu.dimension_semantics<arbitrary>], iteration_bounds = array<i64: 1, 1>, scalar_prefetch = 0 : i64, scratch_operands = 0 : i64, tpu.core_type = #tpu.core_type<tc>, window_params = [{transform_indices = @transform_0, window_bounds = array<i64: 128, 32>}, {pipeline_mode = #tpu.pipeline_mode<synchronous>, transform_indices = @transform_1, window_bounds = array<i64: 1, 32>}, {transform_indices = @transform_2, window_bounds = array<i64: 1, 1>}, {transform_indices = @transform_3, window_bounds = array<i64: 1, 128>}]} {
    %c0_i32 = arith.constant 0 : i32
    %0 = arith.cmpi eq, %arg1, %c0_i32 : i32
    %1 = arith.extui %0 : i1 to i32
    %c0_i32_0 = arith.constant 0 : i32
    %2 = arith.cmpi ne, %1, %c0_i32_0 : i32
    scf.if %2 {
      %cst_10 = arith.constant 0.000000e+00 : f32
      %12 = vector.broadcast %cst_10 : f32 to vector<1x128xf32>
      %c0_11 = arith.constant 0 : index
      %c0_12 = arith.constant 0 : index
      %13 = vector.load %arg5[%c0_11, %c0_12] : memref<1x128xf32, #tpu.memory_space<vmem>>, vector<1x128xf32>
      tpu.vector_store %arg5[%c0_11, %c0_12], %12 {strides = array<i32>} : memref<1x128xf32, #tpu.memory_space<vmem>>, vector<1x128xf32>,
    } else {
    }
    %c0 = arith.constant 0 : index
    %c0_1 = arith.constant 0 : index
    %3 = vector.load %arg2[%c0, %c0_1] : memref<128x32xf32, #tpu.memory_space<vmem>>, vector<128x32xf32>
    %c0_2 = arith.constant 0 : index
    %c0_3 = arith.constant 0 : index
    %4 = vector.load %arg3[%c0_2, %c0_3] : memref<1x32xf32, #tpu.memory_space<vmem>>, vector<1x32xf32>
    %c0_4 = arith.constant 0 : index
    %c0_5 = arith.constant 0 : index
    %5 = vector.load %arg5[%c0_4, %c0_5] : memref<1x128xf32, #tpu.memory_space<vmem>>, vector<1x128xf32>
    %cst = arith.constant dense<0.000000e+00> : vector<1x128xf32>
    %6 = tpu.matmul %4, %3, %cst {dimension_numbers = #tpu.dot_dimension_numbers<[1], [1], [0], [0], [0, 0, 1, 0], [], []>} : vector<1x32xf32>, vector<128x32xf32>, vector<1x128xf32> -> vector<1x128xf32>
    %7 = arith.addf %5, %6 : vector<1x128xf32>
    %c0_6 = arith.constant 0 : index
    %c0_7 = arith.constant 0 : index
    %8 = vector.load %arg5[%c0_6, %c0_7] : memref<1x128xf32, #tpu.memory_space<vmem>>, vector<1x128xf32>
    tpu.vector_store %arg5[%c0_6, %c0_7], %7 {strides = array<i32>} : memref<1x128xf32, #tpu.memory_space<vmem>>, vector<1x128xf32>,
    %c0_i32_8 = arith.constant 0 : i32
    %9 = arith.cmpi eq, %arg1, %c0_i32_8 : i32
    %10 = arith.extui %9 : i1 to i32
    %c0_i32_9 = arith.constant 0 : i32
    %11 = arith.cmpi ne, %10, %c0_i32_9 : i32
    scf.if %11 {
      %c0_10 = arith.constant 0 : index
      %c0_11 = arith.constant 0 : index
      %12 = vector.load %arg5[%c0_10, %c0_11] : memref<1x128xf32, #tpu.memory_space<vmem>>, vector<1x128xf32>
      %c0_12 = arith.constant 0 : index
      %c0_13 = arith.constant 0 : index
      %13 = memref.load %arg4[%c0_12, %c0_13] : memref<1x1xf32, #tpu.memory_space<smem>>
      %14 = vector.broadcast %13 : f32 to vector<1x128xf32>
      %15 = arith.addf %12, %14 : vector<1x128xf32>
      %cst_14 = arith.constant 0.000000e+00 : f32
      %16 = vector.broadcast %cst_14 : f32 to vector<1x128xf32>
      %17 = arith.subf %16, %15 : vector<1x128xf32>
      %18 = math.exp %17 : vector<1x128xf32>
      %cst_15 = arith.constant 1.000000e+00 : f32
      %19 = vector.broadcast %cst_15 : f32 to vector<1x128xf32>
      %20 = arith.addf %19, %18 : vector<1x128xf32>
      %cst_16 = arith.constant 1.000000e+00 : f32
      %21 = vector.broadcast %cst_16 : f32 to vector<1x128xf32>
      %22 = arith.divf %21, %20 : vector<1x128xf32>
      %c0_17 = arith.constant 0 : index
      %c0_18 = arith.constant 0 : index
      %23 = vector.load %arg5[%c0_17, %c0_18] : memref<1x128xf32, #tpu.memory_space<vmem>>, vector<1x128xf32>
      tpu.vector_store %arg5[%c0_17, %c0_18], %22 {strides = array<i32>} : memref<1x128xf32, #tpu.memory_space<vmem>>, vector<1x128xf32>,
    } else {
    }
    return
  }
  func.func @transform_0(%arg0: i32, %arg1: i32) -> (i32, i32) {
    %c0_i32 = arith.constant 0 : i32
    return %arg0, %arg1 : i32, i32
  }
  func.func @transform_1(%arg0: i32, %arg1: i32) -> (i32, i32) {
    %c0_i32 = arith.constant 0 : i32
    %c0_i32_0 = arith.constant 0 : i32
    %c0_i32_1 = arith.constant 0 : i32
    return %c0_i32, %c0_i32_0 : i32, i32
  }
  func.func @transform_2(%arg0: i32, %arg1: i32) -> (i32, i32) {
    %c0_i32 = arith.constant 0 : i32
    %c0_i32_0 = arith.constant 0 : i32
    %c0_i32_1 = arith.constant 0 : i32
    return %c0_i32, %c0_i32_0 : i32, i32
  }
  func.func @transform_3(%arg0: i32, %arg1: i32) -> (i32, i32) {
    %c0_i32 = arith.constant 0 : i32
    %c0_i32_0 = arith.constant 0 : i32
    return %c0_i32, %arg0 : i32, i32
  }
}

</mosaic_0001>

<bundles_post_ra>
// kernel: tpu_custom_call.1
= control target key start
LH: loop header
LB: loop body
LE: loop exit
PB: predicated region body
PF: predicated region fallthrough
CT: control target
= control target key end

     0   :  { %9 = vsyncpa [#allocation4], 0  ;;  %s446_s0 = inlined_call_operand.hbm [shape: f32[8,32], index: 0, kind: input, shape index: {}]   ;;  %s447_s1 = inlined_call_operand.vmem [shape: f32[1,32], index: 1, kind: input, shape index: {}]   ;;  %s448_s2 = inlined_call_operand.<no memory space> [shape: f32[1,1], index: 2, kind: input, shape index: {}]   ;;  %s449_s3 = inlined_call_operand.hbm [shape: f32[1,8], index: 3, kind: output, shape index: {}]  }
   0x1   :  { %10 = vsyncpa [#allocation5], 0 }
   0x2   :  { %15 = vsyncadd [#allocation4], 1920  ;;  %s366_s12 = smov [#allocation3]   ;;  %s318_s16 = scalar_lea.hbm %s446_s0, 128 }
   0x3   :  { %s16_s13 = sshll.u32 %s366_s12, 4  ;;  %p319_p0 = scmp.ne.s32.totalorder %s446_s0, %s318_s16  ;;  %s17_s13 = int_to_ptr.vmem [resolvable:$true] %s16_s13 }
   0x4   :  { %p322_p1 = scmp.lt.u32.totalorder %s318_s16, %s446_s0 }
   0x6   :  { %p324_p2 = pnand %p322_p1, %p319_p0 }
   0x8   :  { %327 = shalt.err (!%p324_p2)
}
   0x9   :  { %s328_s21 = scalar_lea.vmem %s17_s13, 128  ;;  %s332_s22 = scalar_lea.vmem %s17_s13, 2048 }
   0xa   :  { %p329_p3 = scmp.ne.s32.totalorder %s17_s13, %s328_s21  ;;  %p333_p4 = scmp.lt.s32.totalorder %s17_s13, %s17_s13 }
   0xb   :  { %p334_p5 = scmp.lt.s32.totalorder %s332_s22, %s328_s21 }
   0xd   :  { %p335_p6 = por %p334_p5, %p333_p4 }
   0xf   :  { %p336_p7 = pnand %p335_p6, %p329_p3 }
  0x11   :  { %339 = shalt.err (!%p336_p7)
}
  0x12   :  { %s367_s23 = smov 128   ;;  %s368_s24 = smov 8  }
  0x13   :  { %22 = dma.hbm_to_vmem [thread:$0]  %s446_s0, 128, %s17_s13, [#allocation4], %s367_s23, %s367_s23, %s368_s24  }
  0x14   :  { %362 = dma.done.wait [#allocation4], 2048  }
  0x15   :  { %363 = vsyncadd [#allocation4], 4294965248  ;;  %v369_v0 = vmov 0.0|0.0   ;;  %v370_v1 = vmov 0.0   ;;  %vm371_vm0 = vmmov 0   ;;  %vm53_vm1 = vcmask 261120  }
  0x16   :  { %275 = vmatprep.subr.bf16.mxu0 %v369_v0  ;;  %34 = vst [vmem:[#allocation6] sm:$0x1] %v370_v1  ;;  %272 = vmatprep.mubr.msk.f32.mxu0 %vm371_vm0, %v370_v1  ;;  %v35_v2 = vld [vmem:[#allocation3] sm:$0xff]  ;;  %v36_v3 = vld [vmem:[#allocation3 + $0x8] sm:$0xff]  ;;  %vm407_vm2 = vmpackc.low %vm53_vm1, %vm53_vm1  ;;  %v182_v32 = vstv %s448_s2 }
  0x17   :  { %v276_v5 = vpack.c.bf16 %v36_v3, %v35_v2  ;;  %v37_v6 = vld [vmem:[#allocation3 + $0x10] sm:$0xff]  ;;  %v38_v7 = vld [vmem:[#allocation3 + $0x18] sm:$0xff]  ;;  %v39_v9 = vld [vmem:[#allocation3 + $0x20] sm:$0xff] }
  0x18   :  { %v280_v8 = vpack.c.bf16 %v38_v7, %v37_v6  ;;  %v40_v10 = vld [vmem:[#allocation3 + $0x28] sm:$0xff]  ;;  %v41_v12 = vld [vmem:[#allocation3 + $0x30] sm:$0xff]  ;;  %v42_v13 = vld [vmem:[#allocation3 + $0x38] sm:$0xff] }
  0x19   :  { %278 = vmatpush3.bf16.xpose.msk.msra.mxu0 %vm407_vm2, %v276_v5  ;;  %v284_v11 = vpack.c.bf16 %v40_v10, %v39_v9  ;;  %v288_v14 = vpack.c.bf16 %v42_v13, %v41_v12  ;;  %v43_v15 = vld [vmem:[#allocation3 + $0x40] sm:$0xff]  ;;  %v44_v16 = vld [vmem:[#allocation3 + $0x48] sm:$0xff]  ;;  %v45_v18 = vld [vmem:[#allocation3 + $0x50] sm:$0xff] }
  0x1a   :  { %279 = vmatprep.subr.bf16.mxu0 %v369_v0  ;;  %v292_v17 = vpack.c.bf16 %v44_v16, %v43_v15  ;;  %v46_v19 = vld [vmem:[#allocation3 + $0x58] sm:$0xff]  ;;  %v47_v21 = vld [vmem:[#allocation3 + $0x60] sm:$0xff]  ;;  %v48_v22 = vld [vmem:[#allocation3 + $0x68] sm:$0xff] }
  0x1b   :  { %v296_v20 = vpack.c.bf16 %v46_v19, %v45_v18  ;;  %v300_v23 = vpack.c.bf16 %v48_v22, %v47_v21  ;;  %v49_v24 = vld [vmem:[#allocation3 + $0x70] sm:$0xff]  ;;  %v50_v25 = vld [vmem:[#allocation3 + $0x78] sm:$0xff]  ;;  %v51_v27 = vld [vmem:[%s447_s1] sm:$0x1]  ;;  %s372_s1 = smov [#allocation6]  }
  0x1c   :  { %v304_v26 = vpack.c.bf16 %v50_v25, %v49_v24  ;;  %s197_s30 = sshll.u32 %s372_s1, 4  ;;  %s198_s30 = int_to_ptr.vmem [resolvable:$true] %s197_s30 }
  0x1d   :  { %v52_v28 = vld [vmem:[#allocation6] sm:$0x1]  ;;  %s340_s4 = scalar_lea.vmem %s198_s30, 16  ;;  %s344_s5 = scalar_lea.vmem %s198_s30, 32 }
  0x1e   :  { %p341_p8 = scmp.ne.s32.totalorder %s198_s30, %s340_s4  ;;  %p345_p9 = scmp.lt.s32.totalorder %s198_s30, %s198_s30 }
  0x1f   :  { %p346_p10 = scmp.lt.s32.totalorder %s344_s5, %s340_s4 }
  0x21   :  { %282 = vmatpush3.bf16.xpose.msk.msra.mxu0 %vm407_vm2, %v280_v8  ;;  %p347_p11 = por %p346_p10, %p345_p9 }
  0x22   :  { %283 = vmatprep.subr.bf16.mxu0 %v369_v0 }
  0x23   :  { %p348_p12 = pnand %p347_p11, %p341_p8 }
  0x29   :  { %286 = vmatpush3.bf16.xpose.msk.msra.mxu0 %vm407_vm2, %v284_v11 }
  0x2a   :  { %287 = vmatprep.subr.bf16.mxu0 %v369_v0 }
  0x31   :  { %290 = vmatpush3.bf16.xpose.msk.msra.mxu0 %vm407_vm2, %v288_v14 }
  0x32   :  { %291 = vmatprep.subr.bf16.mxu0 %v369_v0 }
  0x39   :  { %294 = vmatpush3.bf16.xpose.msk.msra.mxu0 %vm407_vm2, %v292_v17 }
  0x3a   :  { %295 = vmatprep.subr.bf16.mxu0 %v369_v0 }
  0x41   :  { %298 = vmatpush3.bf16.xpose.msk.msra.mxu0 %vm407_vm2, %v296_v20 }
  0x42   :  { %299 = vmatprep.subr.bf16.mxu0 %v369_v0 }
  0x49   :  { %302 = vmatpush3.bf16.xpose.msk.msra.mxu0 %vm407_vm2, %v300_v23 }
  0x4a   :  { %303 = vmatprep.subr.bf16.mxu0 %v369_v0 }
  0x51   :  { %306 = vmatpush3.bf16.xpose.msk.msra.mxu0 %vm407_vm2, %v304_v26 }
  0x58   :  { %273 = vmatmul.mubr.msk.f32.vlgmr.msra.gmra.mrb[0].mxu0 %vm53_vm1, %v51_v27 }
 0x12b   :  { %v171_v29 = vpop.f32.mrb[0].mxu0 }
 0x12c   :  { %v175_v30 = vadd.f32 %v171_v29, %v52_v28  ;;  %v274_v31 = vpop.f32.mrb[1].mxu0 }
 0x12e   :  { %176 = vst [vmem:[#allocation6] sm:$0x1] %v175_v30 }
 0x135   :  { %v180_v33 = vld [vmem:[#allocation6] sm:$0x1] }
 0x136   :  { %v183_v34 = vadd.f32 %v182_v32, %v180_v33 }
 0x138   :  { %v184_v35 = vsub.f32 0.0, %v183_v34 }
 0x13a   :  { %v185_v36 = vmul.f32 1.442695, %v184_v35 }
 0x13c   :  { %314 = vpow2.f32 %v185_v36 }
 0x146   :  { %v315_v37 = vpop.eup %314 }
 0x147   :  { %v187_v38 = vadd.f32 1.0, %v315_v37 }
 0x149   :  { %316 = vrcp.f32 %v187_v38 }
 0x153   :  { %v317_v39 = vpop.eup %316 }
 0x154   :  { %190 = vst [vmem:[#allocation6] sm:$0x1] %v317_v39 }
 0x155   :  { %351 = shalt.err (!%p348_p12)
}
 0x156   :  { %s352_s7 = scalar_lea.hbm %s449_s3, 16 }
 0x157   :  { %p353_p13 = scmp.ne.s32.totalorder %s449_s3, %s352_s7  ;;  %p356_p0 = scmp.lt.u32.totalorder %s352_s7, %s449_s3 }
 0x159   :  { %p358_p1 = pnand %p356_p0, %p353_p13 }
 0x15b   :  { %361 = shalt.err (!%p358_p1)
}
 0x15c   :  { %200 = dma.vmem_to_hbm [thread:$0]  %s198_s30, 16, %s449_s3, [#allocation5]  }
 0x15d   :  { %364 = dma.done.wait [#allocation5], 16  }
 0x15e   :  { %365 = vsyncadd [#allocation5], 4294967280 }
 0x15f   :  { %204 = vsyncpa [#allocation4], 1 }
 0x160   :  { %205 = vsyncpa [#allocation5], 1 }

</bundles_post_ra>
